<compile_context>
chip_gen: v7x
topology: tpu7x:2x2x1
jax: 0.10.0
libtpu: 0.0.40
codegen_flags: <defaults>
</compile_context>

<pallas_src>
import functools

import jax
import jax.numpy as jnp
from jax.experimental import pallas as pl
from jax.experimental.pallas import tpu as pltpu


def _round_up(x, m):
    return ((x + m - 1) // m) * m


def _mlp_kernel(x_ref, w1_ref, b1_ref, w2_ref, b2_ref, o_ref):
    # x_ref: (TB, 784) bf16, w1_ref: (784, Hp) bf16, b1_ref: (1, Hp) f32,
    # w2_ref: (Hp, Op) bf16, b2_ref: (1, Op) f32,  o_ref: (TB, Op) f32
    # z1 = x @ w1 + b1 ; a1 = relu(z1)   (bf16 MXU matmul, f32 accumulate)
    z1 = jnp.dot(x_ref[...], w1_ref[...],
                 preferred_element_type=jnp.float32) + b1_ref[...]
    a1 = jnp.maximum(z1, 0.0)

    # dropout(p=0.2) in eval mode == identity

    # z2 = a1 @ w2 + b2  (padded logit columns get a -1e30 bias)
    z2 = jnp.dot(a1.astype(w2_ref.dtype), w2_ref[...],
                 preferred_element_type=jnp.float32) + b2_ref[...]

    # log_softmax along the class axis (numerically stable, f32).
    # Padded columns are ~-1e30 so exp() underflows to 0 and they do not
    # perturb max/sum.
    m = jnp.max(z2, axis=-1, keepdims=True)
    ex = jnp.exp(z2 - m)
    lse = m + jnp.log(jnp.sum(ex, axis=-1, keepdims=True))
    o_ref[...] = (z2 - lse).astype(o_ref.dtype)


def mlp_forward(x, w1, b1, w2, b2, *, tile_b=512, compute_dtype=jnp.bfloat16):
    """Forward pass of NetworkWithSub2.

    x: (B, C, H, W) with C*H*W == 784 (or already (B, 784)).
    Returns log-probabilities of shape (B, 10), float32.
    """
    B = x.shape[0]
    in_dim = w1.shape[0]
    neuron = w1.shape[1]
    out_dim = w2.shape[1]

    # Row-major flatten, identical to torch's x.view(-1, 784); cast to bf16 so
    # the dominant HBM stream (x) is half the bytes.
    xf = x.reshape(B, -1).astype(compute_dtype)
    assert xf.shape[1] == in_dim

    # ---- batch tiling: big tiles, but >=2 grid steps when batch allows it ----
    Bp8 = _round_up(max(B, 1), 8)
    n_steps = max(1, pl.cdiv(Bp8, tile_b))
    if n_steps == 1 and Bp8 >= 16:
        n_steps = 2  # give v7x's second TensorCore work
    tile = _round_up(pl.cdiv(Bp8, n_steps), 8)
    Bp = tile * n_steps
    if Bp != B:
        # This pad fuses with the bf16 convert above under jit (single copy).
        xf = jnp.pad(xf, ((0, Bp - B), (0, 0)))

    # ---- lane-dense padding of hidden and output dims ----
    Hp = _round_up(neuron, 128)
    Op = _round_up(out_dim, 128)

    w1p = jnp.zeros((in_dim, Hp), compute_dtype).at[:, :neuron].set(
        w1.astype(compute_dtype))
    b1p = jnp.zeros((1, Hp), jnp.float32).at[:, :neuron].set(
        b1.reshape(1, -1).astype(jnp.float32))
    # Padded hidden rows of w2 are zero -> padded hidden units contribute 0.
    w2p = jnp.zeros((Hp, Op), compute_dtype).at[:neuron, :out_dim].set(
        w2.astype(compute_dtype))
    # Padded logit columns get a huge negative bias -> exp() == 0 in softmax.
    b2p = jnp.full((1, Op), -1e30, jnp.float32).at[:, :out_dim].set(
        b2.reshape(1, -1).astype(jnp.float32))

    grid = (n_steps,)

    out = pl.pallas_call(
        _mlp_kernel,
        out_shape=jax.ShapeDtypeStruct((Bp, Op), jnp.float32),
        grid_spec=pltpu.PrefetchScalarGridSpec(
            num_scalar_prefetch=0,
            grid=grid,
            in_specs=[
                pl.BlockSpec((tile, in_dim), lambda i: (i, 0)),  # x tile
                pl.BlockSpec((in_dim, Hp), lambda i: (0, 0)),    # w1 (resident)
                pl.BlockSpec((1, Hp), lambda i: (0, 0)),         # b1
                pl.BlockSpec((Hp, Op), lambda i: (0, 0)),        # w2
                pl.BlockSpec((1, Op), lambda i: (0, 0)),         # b2
            ],
            out_specs=pl.BlockSpec((tile, Op), lambda i: (i, 0)),
        ),
        compiler_params=pltpu.CompilerParams(
            dimension_semantics=("parallel",),
        ),
    )(xf, w1p, b1p, w2p, b2p)

    return out[:B, :out_dim]


def init_params(key, neuron):
    """Deterministic init matching the PyTorch module's __init__."""
    k1, k2 = jax.random.split(key)

    def xavier_uniform(k, fan_in, fan_out):
        bound = jnp.sqrt(6.0 / (fan_in + fan_out))
        return jax.random.uniform(
            k, (fan_in, fan_out), dtype=jnp.float32, minval=-bound, maxval=bound
        )

    w1 = xavier_uniform(k1, 784, neuron)
    w2 = xavier_uniform(k2, neuron, 10)
    b1 = jnp.full((neuron,), 0.01, dtype=jnp.float32)
    b2 = jnp.full((10,), 0.01, dtype=jnp.float32)
    return w1, b1, w2, b2


def _reference_forward(x, w1, b1, w2, b2):
    # Pure-JAX f32 reference mirroring the PyTorch forward (eval-mode dropout).
    xf = x.reshape(x.shape[0], -1).astype(jnp.float32)
    z1 = xf @ w1 + b1
    a1 = jnp.maximum(z1, 0.0)
    z2 = a1 @ w2 + b2
    return jax.nn.log_softmax(z2, axis=-1)


if __name__ == "__main__":
    key = jax.random.PRNGKey(0)
    k_x, k_p = jax.random.split(key)

    neuron = 32
    batch = 2
    # MNIST-style NCHW input: (B, 1, 28, 28) -> flattens to 784 features.
    x = jax.random.normal(k_x, (batch, 1, 28, 28), dtype=jnp.float32)

    w1, b1, w2, b2 = init_params(k_p, neuron)

    fwd = jax.jit(functools.partial(mlp_forward, tile_b=512))
    y = fwd(x, w1, b1, w2, b2)
    jax.block_until_ready(y)

    assert y.shape == (batch, 10)

    # Sanity: log_softmax rows should (exp-)sum to 1.
    row_sums = jnp.sum(jnp.exp(y), axis=-1)
    assert bool(jnp.all(jnp.abs(row_sums - 1.0) < 1e-3))

    # Parity vs an f32 reference (bf16 matmul inputs -> loose tolerance).
    y_ref = _reference_forward(x, w1, b1, w2, b2)
    assert bool(jnp.max(jnp.abs(y - y_ref)) < 1e-1)

    print("KERNEL_OK")
</pallas_src>

<mosaic_0001>
module attributes {stable_mosaic.version = 11 : i64} {
  func.func @_mlp_kernel(%arg0: i32, %arg1: memref<8x784xbf16, #tpu.memory_space<vmem>>, %arg2: memref<784x128xbf16, #tpu.memory_space<vmem>>, %arg3: memref<1x128xf32, #tpu.memory_space<vmem>>, %arg4: memref<128x128xbf16, #tpu.memory_space<vmem>>, %arg5: memref<1x128xf32, #tpu.memory_space<vmem>>, %arg6: memref<8x128xf32, #tpu.memory_space<vmem>>) attributes {dimension_semantics = [#tpu.dimension_semantics<parallel>], iteration_bounds = array<i64: 1>, scalar_prefetch = 0 : i64, scratch_operands = 0 : i64, tpu.core_type = #tpu.core_type<tc>, window_params = [{transform_indices = @transform_0, window_bounds = array<i64: 8, 784>}, {pipeline_mode = #tpu.pipeline_mode<synchronous>, transform_indices = @transform_1, window_bounds = array<i64: 784, 128>}, {pipeline_mode = #tpu.pipeline_mode<synchronous>, transform_indices = @transform_2, window_bounds = array<i64: 1, 128>}, {pipeline_mode = #tpu.pipeline_mode<synchronous>, transform_indices = @transform_3, window_bounds = array<i64: 128, 128>}, {pipeline_mode = #tpu.pipeline_mode<synchronous>, transform_indices = @transform_4, window_bounds = array<i64: 1, 128>}, {transform_indices = @transform_5, window_bounds = array<i64: 8, 128>}]} {
    %c0 = arith.constant 0 : index
    %c0_0 = arith.constant 0 : index
    %0 = vector.load %arg1[%c0, %c0_0] : memref<8x784xbf16, #tpu.memory_space<vmem>>, vector<8x784xbf16>
    %c0_1 = arith.constant 0 : index
    %c0_2 = arith.constant 0 : index
    %1 = vector.load %arg2[%c0_1, %c0_2] : memref<784x128xbf16, #tpu.memory_space<vmem>>, vector<784x128xbf16>
    %cst = arith.constant dense<0.000000e+00> : vector<8x128xf32>
    %2 = tpu.matmul %0, %1, %cst {dimension_numbers = #tpu.dot_dimension_numbers<[1], [0], [0], [1], [0, 0, 1, 1], [], []>} : vector<8x784xbf16>, vector<784x128xbf16>, vector<8x128xf32> -> vector<8x128xf32>
    %c0_3 = arith.constant 0 : index
    %c0_4 = arith.constant 0 : index
    %3 = vector.load %arg3[%c0_3, %c0_4] : memref<1x128xf32, #tpu.memory_space<vmem>>, vector<1x128xf32>
    %4 = vector.broadcast %3 : vector<1x128xf32> to vector<8x128xf32>
    %5 = arith.addf %2, %4 : vector<8x128xf32>
    %cst_5 = arith.constant 0.000000e+00 : f32
    %6 = vector.broadcast %cst_5 : f32 to vector<8x128xf32>
    %7 = arith.maximumf %5, %6 : vector<8x128xf32>
    %8 = arith.truncf %7 : vector<8x128xf32> to vector<8x128xbf16>
    %c0_6 = arith.constant 0 : index
    %c0_7 = arith.constant 0 : index
    %9 = vector.load %arg4[%c0_6, %c0_7] : memref<128x128xbf16, #tpu.memory_space<vmem>>, vector<128x128xbf16>
    %cst_8 = arith.constant dense<0.000000e+00> : vector<8x128xf32>
    %10 = tpu.matmul %8, %9, %cst_8 {dimension_numbers = #tpu.dot_dimension_numbers<[1], [0], [0], [1], [0, 0, 1, 1], [], []>} : vector<8x128xbf16>, vector<128x128xbf16>, vector<8x128xf32> -> vector<8x128xf32>
    %c0_9 = arith.constant 0 : index
    %c0_10 = arith.constant 0 : index
    %11 = vector.load %arg5[%c0_9, %c0_10] : memref<1x128xf32, #tpu.memory_space<vmem>>, vector<1x128xf32>
    %12 = vector.broadcast %11 : vector<1x128xf32> to vector<8x128xf32>
    %13 = arith.addf %10, %12 : vector<8x128xf32>
    %cst_11 = arith.constant dense<0xFF800000> : vector<8xf32>
    %14 = vector.multi_reduction <maximumf>, %13, %cst_11 [1] : vector<8x128xf32> to vector<8xf32>
    %15 = vector.shape_cast %14 : vector<8xf32> to vector<8x1xf32>
    %16 = vector.broadcast %15 : vector<8x1xf32> to vector<8x128xf32>
    %17 = arith.subf %13, %16 : vector<8x128xf32>
    %18 = math.exp %17 : vector<8x128xf32>
    %cst_12 = arith.constant dense<0.000000e+00> : vector<8xf32>
    %19 = vector.multi_reduction <add>, %18, %cst_12 [1] : vector<8x128xf32> to vector<8xf32>
    %20 = vector.shape_cast %19 : vector<8xf32> to vector<8x1xf32>
    %21 = math.log %20 : vector<8x1xf32>
    %22 = arith.addf %15, %21 : vector<8x1xf32>
    %23 = vector.broadcast %22 : vector<8x1xf32> to vector<8x128xf32>
    %24 = arith.subf %13, %23 : vector<8x128xf32>
    %c0_13 = arith.constant 0 : index
    %c0_14 = arith.constant 0 : index
    %25 = vector.load %arg6[%c0_13, %c0_14] : memref<8x128xf32, #tpu.memory_space<vmem>>, vector<8x128xf32>
    tpu.vector_store %arg6[%c0_13, %c0_14], %24 {strides = array<i32>} : memref<8x128xf32, #tpu.memory_space<vmem>>, vector<8x128xf32>,
    return
  }
  func.func @transform_0(%arg0: i32) -> (i32, i32) {
    %c0_i32 = arith.constant 0 : i32
    %c0_i32_0 = arith.constant 0 : i32
    return %arg0, %c0_i32 : i32, i32
  }
  func.func @transform_1(%arg0: i32) -> (i32, i32) {
    %c0_i32 = arith.constant 0 : i32
    %c0_i32_0 = arith.constant 0 : i32
    %c0_i32_1 = arith.constant 0 : i32
    return %c0_i32, %c0_i32_0 : i32, i32
  }
  func.func @transform_2(%arg0: i32) -> (i32, i32) {
    %c0_i32 = arith.constant 0 : i32
    %c0_i32_0 = arith.constant 0 : i32
    %c0_i32_1 = arith.constant 0 : i32
    return %c0_i32, %c0_i32_0 : i32, i32
  }
  func.func @transform_3(%arg0: i32) -> (i32, i32) {
    %c0_i32 = arith.constant 0 : i32
    %c0_i32_0 = arith.constant 0 : i32
    %c0_i32_1 = arith.constant 0 : i32
    return %c0_i32, %c0_i32_0 : i32, i32
  }
  func.func @transform_4(%arg0: i32) -> (i32, i32) {
    %c0_i32 = arith.constant 0 : i32
    %c0_i32_0 = arith.constant 0 : i32
    %c0_i32_1 = arith.constant 0 : i32
    return %c0_i32, %c0_i32_0 : i32, i32
  }
  func.func @transform_5(%arg0: i32) -> (i32, i32) {
    %c0_i32 = arith.constant 0 : i32
    %c0_i32_0 = arith.constant 0 : i32
    return %arg0, %c0_i32 : i32, i32
  }
}

</mosaic_0001>

<bundles_post_ra>
// kernel: mlp_forward.1
= control target key start
LH: loop header
LB: loop body
LE: loop exit
PB: predicated region body
PF: predicated region fallthrough
CT: control target
= control target key end

     0   :  { %v981_v41 = vmov 0.0   ;;  %vm982_vm0 = vmmov 0   ;;  %vm448_vm1 = vcmask 130048   ;;  %s1218_s1 = inlined_call_operand.vmem [shape: bf16[784,128], index: 1, kind: input, shape index: {}]   ;;  %s1219_s0 = inlined_call_operand.vmem [shape: bf16[8,784], index: 0, kind: input, shape index: {}]   ;;  %s1220_s3 = inlined_call_operand.vmem [shape: bf16[128,128], index: 3, kind: input, shape index: {}]   ;;  %s1221_s2 = inlined_call_operand.vmem [shape: f32[1,128], index: 2, kind: input, shape index: {}]   ;;  %s1222_s4 = inlined_call_operand.vmem [shape: f32[1,128], index: 4, kind: input, shape index: {}]   ;;  %s1223_s5 = inlined_call_operand.vmem [shape: f32[8,128], index: 5, kind: output, shape index: {}]  }
   0x1   :  { %v913_v0 = vld [vmem:[%s1218_s1 + $0x40] sm:$0xff]   ;;  %v917_v4 = vld [vmem:[%s1218_s1 + $0x48] sm:$0xff]   ;;  %v921_v8 = vld [vmem:[%s1218_s1 + $0x50] sm:$0xff]  }
   0x2   :  { %v914_v1 = vld [vmem:[%s1218_s1] sm:$0xff]   ;;  %808 = vmatprep.subr.bf16.mxu0 %v913_v0  ;;  %v918_v5 = vld [vmem:[%s1218_s1 + $0x8] sm:$0xff]   ;;  %v922_v9 = vld [vmem:[%s1218_s1 + $0x10] sm:$0xff]  }
   0x3   :  { %v915_v2 = vld [vmem:[%s1218_s1 + $0xc0] sm:$0xff]   ;;  %809 = vmatpush3.bf16.msra.mxu0 %v914_v1  ;;  %v919_v6 = vld [vmem:[%s1218_s1 + $0xc8] sm:$0xff]   ;;  %v923_v10 = vld [vmem:[%s1218_s1 + $0xd0] sm:$0xff]  }
   0x4   :  { %v916_v3 = vld [vmem:[%s1218_s1 + $0x80] sm:$0xff]   ;;  %830 = vmatprep.subr.bf16.mxu1 %v915_v2  ;;  %810 = vmatprep.subr.bf16.mxu0 %v917_v4  ;;  %v920_v7 = vld [vmem:[%s1218_s1 + $0x88] sm:$0xff]   ;;  %v924_v11 = vld [vmem:[%s1218_s1 + $0x90] sm:$0xff]  }
   0x5   :  { %831 = vmatpush3.bf16.msra.mxu1 %v916_v3  ;;  %v925_v12 = vld [vmem:[%s1218_s1 + $0x58] sm:$0xff]   ;;  %v929_v16 = vld [vmem:[%s1218_s1 + $0x60] sm:$0xff]   ;;  %v933_v20 = vld [vmem:[%s1218_s1 + $0x68] sm:$0xff]  }
   0x6   :  { %832 = vmatprep.subr.bf16.mxu1 %v919_v6  ;;  %v926_v13 = vld [vmem:[%s1218_s1 + $0x18] sm:$0xff]   ;;  %v930_v17 = vld [vmem:[%s1218_s1 + $0x20] sm:$0xff]   ;;  %v934_v21 = vld [vmem:[%s1218_s1 + $0x28] sm:$0xff]  }
   0x7   :  { %811 = vmatpush3.bf16.msra.mxu0 %v918_v5  ;;  %v927_v14 = vld [vmem:[%s1218_s1 + $0xd8] sm:$0xff]   ;;  %v931_v18 = vld [vmem:[%s1218_s1 + $0xe0] sm:$0xff]   ;;  %v935_v22 = vld [vmem:[%s1218_s1 + $0xe8] sm:$0xff]  }
   0x8   :  { %812 = vmatprep.subr.bf16.mxu0 %v921_v8  ;;  %v928_v15 = vld [vmem:[%s1218_s1 + $0x98] sm:$0xff]   ;;  %v932_v19 = vld [vmem:[%s1218_s1 + $0xa0] sm:$0xff]   ;;  %v936_v23 = vld [vmem:[%s1218_s1 + $0xa8] sm:$0xff]  }
   0x9   :  { %833 = vmatpush3.bf16.msra.mxu1 %v920_v7  ;;  %v937_v24 = vld [vmem:[%s1218_s1 + $0x70] sm:$0xff]   ;;  %v941_v28 = vld [vmem:[%s1218_s1 + $0x78] sm:$0xff]   ;;  %v21_v31 = vld [vmem:[%s1219_s0] sm:$0xff] }
   0xa   :  { %834 = vmatprep.subr.bf16.mxu1 %v923_v10  ;;  %v938_v25 = vld [vmem:[%s1218_s1 + $0x30] sm:$0xff]   ;;  %v942_v29 = vld [vmem:[%s1218_s1 + $0x38] sm:$0xff]   ;;  %v742_v32 = vcombine.low %v21_v31, %v21_v31  ;;  %v743_v33 = vcombine.high %v21_v31, %v21_v31  ;;  %v948_v35 = vld [vmem:[%s1218_s1 + $0x140] sm:$0xff]  }
   0xb   :  { %813 = vmatpush3.bf16.msra.mxu0 %v922_v9  ;;  %v939_v26 = vld [vmem:[%s1218_s1 + $0xf0] sm:$0xff]   ;;  %v943_v30 = vld [vmem:[%s1218_s1 + $0xf8] sm:$0xff]   ;;  %v22_v36 = vld [vmem:[%s1219_s0 + $0x8] sm:$0xff] }
   0xc   :  { %814 = vmatprep.subr.bf16.mxu0 %v925_v12  ;;  %v940_v27 = vld [vmem:[%s1218_s1 + $0xb0] sm:$0xff]   ;;  %v947_v34 = vld [vmem:[%s1218_s1 + $0xb8] sm:$0xff]   ;;  %484 = vmatprep.mubr.bf16.mxu0 %v743_v33  ;;  %v744_v37 = vcombine.low %v22_v36, %v22_v36  ;;  %v745_v38 = vcombine.high %v22_v36, %v22_v36  ;;  %v951_v39 = vld [vmem:[%s1218_s1 + $0x100] sm:$0xff]  }
   0xd   :  { %835 = vmatpush3.bf16.msra.mxu1 %v924_v11  ;;  %v952_v40 = vld [vmem:[%s1218_s1 + $0x148] sm:$0xff]   ;;  %v954_v43 = vld [vmem:[%s1218_s1 + $0x150] sm:$0xff]   ;;  %v956_v45 = vld [vmem:[%s1218_s1 + $0x158] sm:$0xff]  }
   0xe   :  { %836 = vmatprep.subr.bf16.mxu1 %v927_v14  ;;  %524 = vmatprep.mubr.bf16.mxu1 %v745_v38  ;;  %v953_v42 = vld [vmem:[%s1218_s1 + $0x108] sm:$0xff]   ;;  %v955_v44 = vld [vmem:[%s1218_s1 + $0x110] sm:$0xff]   ;;  %v957_v46 = vld [vmem:[%s1218_s1 + $0x118] sm:$0xff]  }
   0xf   :  { %815 = vmatpush3.bf16.msra.mxu0 %v926_v13  ;;  %v958_v47 = vld [vmem:[%s1218_s1 + $0x160] sm:$0xff]   ;;  %v960_v49 = vld [vmem:[%s1218_s1 + $0x168] sm:$0xff]   ;;  %v23_v51 = vld [vmem:[%s1219_s0 + $0x10] sm:$0xff] }
  0x10   :  { %816 = vmatprep.subr.bf16.mxu0 %v929_v16  ;;  %v959_v48 = vld [vmem:[%s1218_s1 + $0x120] sm:$0xff]   ;;  %v946_v52 = vld [vmem:[%s1219_s0 + $0x18] ss:$0 sps:$4 sm:$0xff]   ;;  %v747_v53 = vcombine.high %v23_v51, %v23_v51  ;;  %v961_v54 = vld [vmem:[%s1218_s1 + $0x128] sm:$0xff]   ;;  %v746_v59 = vcombine.low %v23_v51, %v23_v51 }
  0x11   :  { %837 = vmatpush3.bf16.msra.mxu1 %v928_v15  ;;  %v966_v50 = vld [vmem:[%s1218_s1 + $0x180] sm:$0xff]   ;;  %v962_v55 = vld [vmem:[%s1218_s1 + $0x170] sm:$0xff]   ;;  %v964_v57 = vld [vmem:[%s1218_s1 + $0x178] sm:$0xff]  }
  0x12   :  { %838 = vmatprep.subr.bf16.mxu1 %v931_v18  ;;  %v963_v56 = vld [vmem:[%s1218_s1 + $0x130] sm:$0xff]   ;;  %v965_v58 = vld [vmem:[%s1218_s1 + $0x138] sm:$0xff]   ;;  %v969_v60 = vld [vmem:[%s1220_s3] sm:$0xff]  }
  0x13   :  { %817 = vmatpush3.bf16.msra.mxu0 %v930_v17  ;;  %v970_v61 = vld [vmem:[%s1220_s3 + $0x8] sm:$0xff]   ;;  %v971_v62 = vld [vmem:[%s1220_s3 + $0x10] sm:$0xff]   ;;  %v972_v63 = vld [vmem:[%s1220_s3 + $0x18] sm:$0xff]  }
  0x14   :  { %818 = vmatprep.subr.bf16.mxu0 %v933_v20  ;;  %v973_v0 = vld [vmem:[%s1220_s3 + $0x20] sm:$0xff]   ;;  %v974_v1 = vld [vmem:[%s1220_s3 + $0x28] sm:$0xff]   ;;  %v975_v2 = vld [vmem:[%s1220_s3 + $0x30] sm:$0xff]  }
  0x15   :  { %839 = vmatpush3.bf16.msra.mxu1 %v932_v19  ;;  %v976_v3 = vld [vmem:[%s1220_s3 + $0x38] sm:$0xff]   ;;  %v741_v5 = vld [vmem:[%s1221_s2] ss:$0 sm:$0xff] }
  0x16   :  { %840 = vmatprep.subr.bf16.mxu1 %v935_v22 }
  0x17   :  { %819 = vmatpush3.bf16.msra.mxu0 %v934_v21 }
  0x18   :  { %820 = vmatprep.subr.bf16.mxu0 %v937_v24 }
  0x19   :  { %841 = vmatpush3.bf16.msra.mxu1 %v936_v23 }
  0x1a   :  { %842 = vmatprep.subr.bf16.mxu1 %v939_v26 }
  0x1b   :  { %821 = vmatpush3.bf16.msra.mxu0 %v938_v25 }
  0x1c   :  { %822 = vmatprep.subr.bf16.mxu0 %v941_v28 }
  0x1d   :  { %843 = vmatpush3.bf16.msra.mxu1 %v940_v27 }
  0x1e   :  { %844 = vmatprep.subr.bf16.mxu1 %v943_v30  ;;  %v799_v30 = vld [vmem:[%s1222_s4] ss:$0 sm:$0xff] }
  0x1f   :  { %823 = vmatpush3.bf16.msra.mxu0 %v942_v29 }
  0x20   :  { %852 = vmatprep.subr.bf16.mxu0 %v948_v35 }
  0x21   :  { %845 = vmatpush3.bf16.msra.mxu1 %v947_v34 }
  0x22   :  { %485 = vmatmul.mubr.bf16.vlgmr.msra.gmra.mrb[0].mxu0 %v742_v32  ;;  %885 = vmatprep.subr.bf16.mxu1 %v981_v41 }
  0x23   :  { %853 = vmatpush3.bf16.msra.mxu0 %v951_v39  ;;  %564 = vmatprep.mubr.bf16.mxu0 %v747_v53 }
  0x24   :  { %525 = vmatmul.mubr.bf16.vlgmr.msra.gmra.mrb[0].mxu1 %v744_v37  ;;  %854 = vmatprep.subr.bf16.mxu0 %v952_v40 }
  0x25   :  { %887 = vmatprep.mubr.msk.bf16.mxu1 %vm982_vm0, %v981_v41  ;;  %886 = vmatpush3.bf16.msra.mxu1 %v966_v50 }
  0x26   :  { %891 = vmatprep.subr.bf16.mxu1 %v981_v41 }
  0x27   :  { %855 = vmatpush3.bf16.msra.mxu0 %v953_v42 }
  0x28   :  { %856 = vmatprep.subr.bf16.mxu0 %v954_v43 }
  0x2b   :  { %857 = vmatpush3.bf16.msra.mxu0 %v955_v44 }
  0x2c   :  { %858 = vmatprep.subr.bf16.mxu0 %v956_v45  ;;  %888 = vmatmul.mubr.msk.bf16.vlgmr.msra.gmra.mrb[4].mxu1 %vm448_vm1, %v946_v52 }
  0x2d   :  { %907 = vmatprep.mubr.msk.bf16.mxu1 %vm982_vm0, %v981_v41  ;;  %892 = vmatpush3.bf16.msra.mxu1 %v969_v60 }
  0x2e   :  { %893 = vmatprep.subr.bf16.mxu1 %v981_v41 }
  0x2f   :  { %859 = vmatpush3.bf16.msra.mxu0 %v957_v46 }
  0x30   :  { %860 = vmatprep.subr.bf16.mxu0 %v958_v47 }
  0x31   :  { %894 = vmatpush3.bf16.msra.mxu1 %v970_v61 }
  0x32   :  { %895 = vmatprep.subr.bf16.mxu1 %v981_v41 }
  0x33   :  { %861 = vmatpush3.bf16.msra.mxu0 %v959_v48 }
  0x34   :  { %862 = vmatprep.subr.bf16.mxu0 %v960_v49 }
  0x35   :  { %896 = vmatpush3.bf16.msra.mxu1 %v971_v62 }
  0x36   :  { %897 = vmatprep.subr.bf16.mxu1 %v981_v41 }
  0x37   :  { %863 = vmatpush3.bf16.msra.mxu0 %v961_v54 }
  0x38   :  { %864 = vmatprep.subr.bf16.mxu0 %v962_v55 }
  0x39   :  { %898 = vmatpush3.bf16.msra.mxu1 %v972_v63 }
  0x3a   :  { %899 = vmatprep.subr.bf16.mxu1 %v981_v41 }
  0x3b   :  { %865 = vmatpush3.bf16.msra.mxu0 %v963_v56 }
  0x3c   :  { %866 = vmatprep.subr.bf16.mxu0 %v964_v57 }
  0x3d   :  { %900 = vmatpush3.bf16.msra.mxu1 %v973_v0 }
  0x3e   :  { %901 = vmatprep.subr.bf16.mxu1 %v981_v41 }
  0x3f   :  { %867 = vmatpush3.bf16.msra.mxu0 %v965_v58 }
  0x41   :  { %902 = vmatpush3.bf16.msra.mxu1 %v974_v1 }
  0x42   :  { %565 = vmatmul.mubr.bf16.vlgmr.msra.gmra.mrb[4].mxu0 %v746_v59  ;;  %903 = vmatprep.subr.bf16.mxu1 %v981_v41 }
  0x45   :  { %904 = vmatpush3.bf16.msra.mxu1 %v975_v2 }
  0x46   :  { %905 = vmatprep.subr.bf16.mxu1 %v981_v41 }
  0x49   :  { %906 = vmatpush3.bf16.msra.mxu1 %v976_v3 }
  0xf5   :  { %v824_v4 = vpop.f32.mrb[0].mxu0 }
  0xf6   :  { %v825_v6 = vpop.f32.mrb[1].mxu0 }
  0xf7   :  { %v826_v7 = vadd.f32 %v825_v6, %v824_v4  ;;  %v827_v8 = vpop.f32.mrb[2].mxu0  ;;  %v846_v9 = vpop.f32.mrb[0].mxu1 }
  0xf8   :  { %v828_v10 = vpop.f32.mrb[3].mxu0  ;;  %v847_v12 = vpop.f32.mrb[1].mxu1 }
  0xf9   :  { %v487_v11 = vadd.f32 %v826_v7, %v741_v5  ;;  %v848_v13 = vadd.f32 %v847_v12, %v846_v9  ;;  %v849_v14 = vpop.f32.mrb[2].mxu1 }
  0xfa   :  { %v850_v15 = vpop.f32.mrb[3].mxu1 }
  0xfb   :  { %v527_v16 = vadd.f32 %v848_v13, %v487_v11 }
  0xff   :  { %v606_v17 = vpop.f32.mrb[4].mxu1 }
 0x100   :  { %v889_v18 = vpop.f32.mrb[5].mxu1 }
 0x101   :  { %v609_v19 = vpop.f32.mrb[6].mxu1 }
 0x102   :  { %v890_v20 = vpop.f32.mrb[7].mxu1 }
 0x115   :  { %v868_v21 = vpop.f32.mrb[4].mxu0 }
 0x116   :  { %v869_v22 = vpop.f32.mrb[5].mxu0 }
 0x117   :  { %v870_v23 = vadd.f32 %v869_v22, %v868_v21  ;;  %v871_v24 = vpop.f32.mrb[6].mxu0 }
 0x118   :  { %v872_v25 = vpop.f32.mrb[7].mxu0 }
 0x119   :  { %v567_v26 = vadd.f32 %v870_v23, %v527_v16 }
 0x11b   :  { %v607_v27 = vadd.f32 %v606_v17, %v567_v26 }
 0x11d   :  { %v612_v28 = vmax.f32 %v607_v27, 0.0 }
 0x11f   :  { %v613_v29 = vpack.c.bf16 %v612_v28, %v612_v28 }
 0x121   :  { %908 = vmatmul.mubr.bf16.vlgmr.msra.gmra.mrb[8].mxu1 %v613_v29 }
 0x1f4   :  { %v719_v31 = vpop.f32.mrb[8].mxu1 }
 0x1f5   :  { %v720_v32 = vadd.f32 %v799_v30, %v719_v31  ;;  %v909_v33 = vpop.f32.mrb[9].mxu1 }
 0x1f6   :  { %v722_v34 = vpop.f32.mrb[10].mxu1 }
 0x1f7   :  { %725 = vmax.xlane.f32.xlu0 %v720_v32  ;;  %v910_v35 = vpop.f32.mrb[11].mxu1 }
 0x284   :  { %v726_v36 = vpop.xlane.xlu0 %725 }
 0x285   :  { %v727_v37 = vsub.f32 %v720_v32, %v726_v36 }
 0x287   :  { %v728_v38 = vmul.f32 1.442695, %v727_v37 }
 0x289   :  { %977 = vpow2.f32 %v728_v38 }
 0x293   :  { %v978_v39 = vpop.eup %977 }
 0x294   :  { %730 = vadd.xlane.f32.xlu0 %v978_v39 }
 0x321   :  { %v731_v40 = vpop.xlane.xlu0 %730 }
 0x322   :  { %979 = vlog2.f32 %v731_v40 }
 0x32c   :  { %v980_v41 = vpop.eup %979 }
 0x32d   :  { %v733_v42 = vmul.f32 0.6931472, %v980_v41 }
 0x32f   :  { %v734_v43 = vadd.f32 %v733_v42, %v726_v36 }
 0x331   :  { %v735_v44 = vsub.f32 %v720_v32, %v734_v43 }
 0x333   :  { %736 = vst [vmem:[%s1223_s5] sm:$0xff] %v735_v44 }

</bundles_post_ra>
